<compile_context>
chip_gen: v5e
topology: v5e:2x2
jax: 0.10.0
libtpu: 0.0.40
codegen_flags: <defaults>
</compile_context>

<pallas_src>
import math
import jax
import jax.numpy as jnp
from jax.experimental import pallas as pl
from jax.experimental.pallas import tpu as pltpu

# ----------------------------- config (small) ------------------------------
B = 2          # batch
L = 8          # sequence length (power of 2 -> xor batch mask)
D = 32         # hidden_size
H = 4          # num_attention_heads
DH = D // H    # attention_head_size
BL = B * L     # flattened rows
LN_EPS = 1e-12
NEG_INF = -1e30


def _attention_kernel(x_ref, wqkv_ref, bqkv_ref, wo_ref, o_ref):
    """Grid-less: whole (B*L, D) problem resident in VMEM."""
    x = x_ref[...].astype(jnp.float32)                     # (BL, D)  residual

    # ---- LayerNorm statistics only (affine folded into wqkv / bqkv) ----
    mean = jnp.mean(x, axis=-1, keepdims=True)
    xc = x - mean
    var = jnp.mean(xc * xc, axis=-1, keepdims=True)
    normed = xc * jax.lax.rsqrt(var + LN_EPS)              # (BL, D)

    # ---- fused Q/K/V projection (gamma & softmax scale folded into weights,
    #      beta folded into the bias row) ----
    qkv = jnp.dot(normed, wqkv_ref[...],
                  preferred_element_type=jnp.float32) + bqkv_ref[...]   # (BL, 3D)

    # ---- block-diagonal batch mask: rows of different batch elements don't attend.
    #      L is a power of two -> xor-compare instead of integer division. ----
    row = jax.lax.broadcasted_iota(jnp.int32, (BL, BL), 0)
    col = jax.lax.broadcasted_iota(jnp.int32, (BL, BL), 1)
    same_batch = (row ^ col) < L                           # (BL, BL) bool, hoisted

    # ---- per-head attention; Wo folded in per head, residual seeds the accumulator ----
    out = x                                                # (BL, D) f32 accumulator
    for h in range(H):
        qh = qkv[:, h * DH:(h + 1) * DH]                   # (BL, DH)  (already scaled)
        kh = qkv[:, D + h * DH:D + (h + 1) * DH]           # (BL, DH)
        vh = qkv[:, 2 * D + h * DH:2 * D + (h + 1) * DH]   # (BL, DH)

        # q k^T without materializing a transpose: contract on dim 1 of both.
        s = jax.lax.dot_general(qh, kh, (((1,), (1,)), ((), ())),
                                preferred_element_type=jnp.float32)  # (BL, BL)
        s = jnp.where(same_batch, s, NEG_INF)
        s = s - jnp.max(s, axis=-1, keepdims=True)
        p = jnp.exp(s)                                     # unnormalized probs
        denom = jnp.sum(p, axis=-1, keepdims=True)         # (BL, 1)

        # Deferred normalization: PV matmul first, EUP reciprocal scales the
        # narrow (BL, DH) context instead of the (BL, BL) probs.
        ctx = jnp.dot(p, vh, preferred_element_type=jnp.float32) \
              * pl.reciprocal(denom, approx=True)          # (BL, DH)

        # Fold output projection per head (static row-slice of pre-transposed Wo).
        out = out + jnp.dot(ctx, wo_ref[h * DH:(h + 1) * DH, :],
                            preferred_element_type=jnp.float32)     # (BL, D)

    o_ref[...] = out.astype(o_ref.dtype)


def apertis_attention(x, gamma, beta, wq, wk, wv, wo):
    """x: (B, L, D) float32. Weights: (D, D) PyTorch-style (out, in)."""
    # One-time weight prep (layout plumbing, outside the kernel):
    #   * transpose to (in, out), fuse Q/K/V along the output dim,
    #   * fold 1/sqrt(DH) into the Q block,
    #   * fold LayerNorm affine: diag(gamma) into the weight, beta into a bias row.
    scale = 1.0 / math.sqrt(DH)
    wqkv_base = jnp.concatenate([wq.T * scale, wk.T, wv.T], axis=1)   # (D, 3D)
    bqkv = beta[None, :] @ wqkv_base                                  # (1, 3D)
    wqkv_t = gamma[:, None] * wqkv_base                               # (D, 3D)
    wo_t = wo.T                                                       # (D, D)

    x2 = x.reshape(BL, D)

    out = pl.pallas_call(
        _attention_kernel,
        out_shape=jax.ShapeDtypeStruct((BL, D), x.dtype),
        in_specs=[
            pl.BlockSpec(memory_space=pltpu.MemorySpace.VMEM),   # x (flattened)
            pl.BlockSpec(memory_space=pltpu.MemorySpace.VMEM),   # fused W_qkv^T (gamma+scale folded)
            pl.BlockSpec(memory_space=pltpu.MemorySpace.VMEM),   # qkv bias row (beta folded)
            pl.BlockSpec(memory_space=pltpu.MemorySpace.VMEM),   # W_o^T
        ],
        out_specs=pl.BlockSpec(memory_space=pltpu.MemorySpace.VMEM),
    )(x2, wqkv_t, bqkv, wo_t)
    return out.reshape(B, L, D)


def _reference(x, gamma, beta, wq, wk, wv, wo):
    mean = jnp.mean(x, axis=-1, keepdims=True)
    var = jnp.mean((x - mean) ** 2, axis=-1, keepdims=True)
    h = (x - mean) / jnp.sqrt(var + LN_EPS) * gamma + beta
    q = h @ wq.T
    k = h @ wk.T
    v = h @ wv.T

    def split(t):  # (B, L, D) -> (B, H, L, DH)
        return t.reshape(B, L, H, DH).transpose(0, 2, 1, 3)

    qh, kh, vh = split(q), split(k), split(v)
    scores = jnp.einsum('bhld,bhmd->bhlm', qh, kh) / math.sqrt(DH)
    probs = jax.nn.softmax(scores, axis=-1)
    ctx = jnp.einsum('bhlm,bhmd->bhld', probs, vh)
    ctx = ctx.transpose(0, 2, 1, 3).reshape(B, L, D)
    return ctx @ wo.T + x


if __name__ == "__main__":
    key = jax.random.PRNGKey(0)
    kx, kg, kb, k1, k2, k3, k4 = jax.random.split(key, 7)

    x = jax.random.normal(kx, (B, L, D), dtype=jnp.float32)
    # LayerNorm params (torch init: gamma=1, beta=0 — perturb slightly, deterministic)
    gamma = 1.0 + 0.01 * jax.random.normal(kg, (D,), dtype=jnp.float32)
    beta = 0.01 * jax.random.normal(kb, (D,), dtype=jnp.float32)
    # Linear weights (out_features, in_features), no bias (dropout_p != 0 in config)
    init_scale = 0.02
    wq = init_scale * jax.random.normal(k1, (D, D), dtype=jnp.float32)
    wk = init_scale * jax.random.normal(k2, (D, D), dtype=jnp.float32)
    wv = init_scale * jax.random.normal(k3, (D, D), dtype=jnp.float32)
    wo = init_scale * jax.random.normal(k4, (D, D), dtype=jnp.float32)

    out = apertis_attention(x, gamma, beta, wq, wk, wv, wo)
    out = jax.block_until_ready(out)

    ref = _reference(x, gamma, beta, wq, wk, wv, wo)
    assert out.shape == (B, L, D)
    # TODO(synk): if the approx EUP reciprocal ever exceeds tolerance, flip approx=False.
    assert jnp.allclose(out, ref, rtol=1e-4, atol=1e-4), "mismatch vs JAX reference"

    print("KERNEL_OK")
</pallas_src>

<mosaic_0001>
module attributes {stable_mosaic.version = 11 : i64} {
  func.func @_attention_kernel(%arg0: memref<16x32xf32, #tpu.memory_space<vmem>>, %arg1: memref<32x96xf32, #tpu.memory_space<vmem>>, %arg2: memref<1x96xf32, #tpu.memory_space<vmem>>, %arg3: memref<32x32xf32, #tpu.memory_space<vmem>>, %arg4: memref<16x32xf32, #tpu.memory_space<vmem>>) attributes {dimension_semantics = [], scalar_prefetch = 0 : i64, scratch_operands = 0 : i64, tpu.core_type = #tpu.core_type<tc>} {
    %c0 = arith.constant 0 : index
    %c0_0 = arith.constant 0 : index
    %0 = vector.load %arg0[%c0, %c0_0] : memref<16x32xf32, #tpu.memory_space<vmem>>, vector<16x32xf32>
    %cst = arith.constant dense<0.000000e+00> : vector<16xf32>
    %1 = vector.multi_reduction <add>, %0, %cst [1] : vector<16x32xf32> to vector<16xf32>
    %2 = vector.shape_cast %1 : vector<16xf32> to vector<16x1xf32>
    %cst_1 = arith.constant 3.200000e+01 : f32
    %3 = vector.broadcast %cst_1 : f32 to vector<16x1xf32>
    %4 = arith.divf %2, %3 : vector<16x1xf32>
    %5 = vector.broadcast %4 : vector<16x1xf32> to vector<16x32xf32>
    %6 = arith.subf %0, %5 : vector<16x32xf32>
    %7 = arith.mulf %6, %6 : vector<16x32xf32>
    %cst_2 = arith.constant dense<0.000000e+00> : vector<16xf32>
    %8 = vector.multi_reduction <add>, %7, %cst_2 [1] : vector<16x32xf32> to vector<16xf32>
    %9 = vector.shape_cast %8 : vector<16xf32> to vector<16x1xf32>
    %cst_3 = arith.constant 3.200000e+01 : f32
    %10 = vector.broadcast %cst_3 : f32 to vector<16x1xf32>
    %11 = arith.divf %9, %10 : vector<16x1xf32>
    %cst_4 = arith.constant 9.99999996E-13 : f32
    %12 = vector.broadcast %cst_4 : f32 to vector<16x1xf32>
    %13 = arith.addf %11, %12 : vector<16x1xf32>
    %14 = math.rsqrt %13 : vector<16x1xf32>
    %15 = vector.broadcast %14 : vector<16x1xf32> to vector<16x32xf32>
    %16 = arith.mulf %6, %15 : vector<16x32xf32>
    %c0_5 = arith.constant 0 : index
    %c0_6 = arith.constant 0 : index
    %17 = vector.load %arg1[%c0_5, %c0_6] : memref<32x96xf32, #tpu.memory_space<vmem>>, vector<32x96xf32>
    %cst_7 = arith.constant dense<0.000000e+00> : vector<16x96xf32>
    %18 = tpu.matmul %16, %17, %cst_7 {dimension_numbers = #tpu.dot_dimension_numbers<[1], [0], [0], [1], [0, 0, 1, 1], [], []>} : vector<16x32xf32>, vector<32x96xf32>, vector<16x96xf32> -> vector<16x96xf32>
    %c0_8 = arith.constant 0 : index
    %c0_9 = arith.constant 0 : index
    %19 = vector.load %arg2[%c0_8, %c0_9] : memref<1x96xf32, #tpu.memory_space<vmem>>, vector<1x96xf32>
    %20 = vector.broadcast %19 : vector<1x96xf32> to vector<16x96xf32>
    %21 = arith.addf %18, %20 : vector<16x96xf32>
    %22 = tpu.iota {dimensions = array<i32: 0>} : vector<16x16xi32>
    %23 = tpu.iota {dimensions = array<i32: 1>} : vector<16x16xi32>
    %24 = arith.xori %22, %23 : vector<16x16xi32>
    %c8_i32 = arith.constant 8 : i32
    %25 = vector.broadcast %c8_i32 : i32 to vector<16x16xi32>
    %26 = arith.cmpi slt, %24, %25 : vector<16x16xi32>
    %27 = vector.extract_strided_slice %21 {offsets = [0, 0], sizes = [16, 8], strides = [1, 1]} : vector<16x96xf32> to vector<16x8xf32>
    %28 = vector.extract_strided_slice %21 {offsets = [0, 32], sizes = [16, 8], strides = [1, 1]} : vector<16x96xf32> to vector<16x8xf32>
    %29 = vector.extract_strided_slice %21 {offsets = [0, 64], sizes = [16, 8], strides = [1, 1]} : vector<16x96xf32> to vector<16x8xf32>
    %cst_10 = arith.constant dense<0.000000e+00> : vector<16x16xf32>
    %30 = tpu.matmul %27, %28, %cst_10 {dimension_numbers = #tpu.dot_dimension_numbers<[1], [1], [0], [0], [0, 0, 1, 0], [], []>} : vector<16x8xf32>, vector<16x8xf32>, vector<16x16xf32> -> vector<16x16xf32>
    %cst_11 = arith.constant -1.000000e+30 : f32
    %31 = vector.broadcast %cst_11 : f32 to vector<16x16xf32>
    %32 = arith.select %26, %30, %31 : vector<16x16xi1>, vector<16x16xf32>
    %cst_12 = arith.constant dense<0xFF800000> : vector<16xf32>
    %33 = vector.multi_reduction <maximumf>, %32, %cst_12 [1] : vector<16x16xf32> to vector<16xf32>
    %34 = vector.shape_cast %33 : vector<16xf32> to vector<16x1xf32>
    %35 = vector.broadcast %34 : vector<16x1xf32> to vector<16x16xf32>
    %36 = arith.subf %32, %35 : vector<16x16xf32>
    %37 = math.exp %36 : vector<16x16xf32>
    %cst_13 = arith.constant dense<0.000000e+00> : vector<16xf32>
    %38 = vector.multi_reduction <add>, %37, %cst_13 [1] : vector<16x16xf32> to vector<16xf32>
    %39 = vector.shape_cast %38 : vector<16xf32> to vector<16x1xf32>
    %cst_14 = arith.constant dense<0.000000e+00> : vector<16x8xf32>
    %40 = tpu.matmul %37, %29, %cst_14 {dimension_numbers = #tpu.dot_dimension_numbers<[1], [0], [0], [1], [0, 0, 1, 1], [], []>} : vector<16x16xf32>, vector<16x8xf32>, vector<16x8xf32> -> vector<16x8xf32>
    %41 = tpu.reciprocal %39 {approx = true} : vector<16x1xf32> -> vector<16x1xf32>
    %42 = vector.broadcast %41 : vector<16x1xf32> to vector<16x8xf32>
    %43 = arith.mulf %40, %42 : vector<16x8xf32>
    %c0_15 = arith.constant 0 : index
    %c0_16 = arith.constant 0 : index
    %44 = vector.load %arg3[%c0_15, %c0_16] : memref<32x32xf32, #tpu.memory_space<vmem>>, vector<8x32xf32>
    %cst_17 = arith.constant dense<0.000000e+00> : vector<16x32xf32>
    %45 = tpu.matmul %43, %44, %cst_17 {dimension_numbers = #tpu.dot_dimension_numbers<[1], [0], [0], [1], [0, 0, 1, 1], [], []>} : vector<16x8xf32>, vector<8x32xf32>, vector<16x32xf32> -> vector<16x32xf32>
    %46 = arith.addf %0, %45 : vector<16x32xf32>
    %47 = vector.extract_strided_slice %21 {offsets = [0, 8], sizes = [16, 8], strides = [1, 1]} : vector<16x96xf32> to vector<16x8xf32>
    %48 = vector.extract_strided_slice %21 {offsets = [0, 40], sizes = [16, 8], strides = [1, 1]} : vector<16x96xf32> to vector<16x8xf32>
    %49 = vector.extract_strided_slice %21 {offsets = [0, 72], sizes = [16, 8], strides = [1, 1]} : vector<16x96xf32> to vector<16x8xf32>
    %cst_18 = arith.constant dense<0.000000e+00> : vector<16x16xf32>
    %50 = tpu.matmul %47, %48, %cst_18 {dimension_numbers = #tpu.dot_dimension_numbers<[1], [1], [0], [0], [0, 0, 1, 0], [], []>} : vector<16x8xf32>, vector<16x8xf32>, vector<16x16xf32> -> vector<16x16xf32>
    %cst_19 = arith.constant -1.000000e+30 : f32
    %51 = vector.broadcast %cst_19 : f32 to vector<16x16xf32>
    %52 = arith.select %26, %50, %51 : vector<16x16xi1>, vector<16x16xf32>
    %cst_20 = arith.constant dense<0xFF800000> : vector<16xf32>
    %53 = vector.multi_reduction <maximumf>, %52, %cst_20 [1] : vector<16x16xf32> to vector<16xf32>
    %54 = vector.shape_cast %53 : vector<16xf32> to vector<16x1xf32>
    %55 = vector.broadcast %54 : vector<16x1xf32> to vector<16x16xf32>
    %56 = arith.subf %52, %55 : vector<16x16xf32>
    %57 = math.exp %56 : vector<16x16xf32>
    %cst_21 = arith.constant dense<0.000000e+00> : vector<16xf32>
    %58 = vector.multi_reduction <add>, %57, %cst_21 [1] : vector<16x16xf32> to vector<16xf32>
    %59 = vector.shape_cast %58 : vector<16xf32> to vector<16x1xf32>
    %cst_22 = arith.constant dense<0.000000e+00> : vector<16x8xf32>
    %60 = tpu.matmul %57, %49, %cst_22 {dimension_numbers = #tpu.dot_dimension_numbers<[1], [0], [0], [1], [0, 0, 1, 1], [], []>} : vector<16x16xf32>, vector<16x8xf32>, vector<16x8xf32> -> vector<16x8xf32>
    %61 = tpu.reciprocal %59 {approx = true} : vector<16x1xf32> -> vector<16x1xf32>
    %62 = vector.broadcast %61 : vector<16x1xf32> to vector<16x8xf32>
    %63 = arith.mulf %60, %62 : vector<16x8xf32>
    %c8 = arith.constant 8 : index
    %c0_23 = arith.constant 0 : index
    %64 = vector.load %arg3[%c8, %c0_23] : memref<32x32xf32, #tpu.memory_space<vmem>>, vector<8x32xf32>
    %cst_24 = arith.constant dense<0.000000e+00> : vector<16x32xf32>
    %65 = tpu.matmul %63, %64, %cst_24 {dimension_numbers = #tpu.dot_dimension_numbers<[1], [0], [0], [1], [0, 0, 1, 1], [], []>} : vector<16x8xf32>, vector<8x32xf32>, vector<16x32xf32> -> vector<16x32xf32>
    %66 = arith.addf %46, %65 : vector<16x32xf32>
    %67 = vector.extract_strided_slice %21 {offsets = [0, 16], sizes = [16, 8], strides = [1, 1]} : vector<16x96xf32> to vector<16x8xf32>
    %68 = vector.extract_strided_slice %21 {offsets = [0, 48], sizes = [16, 8], strides = [1, 1]} : vector<16x96xf32> to vector<16x8xf32>
    %69 = vector.extract_strided_slice %21 {offsets = [0, 80], sizes = [16, 8], strides = [1, 1]} : vector<16x96xf32> to vector<16x8xf32>
    %cst_25 = arith.constant dense<0.000000e+00> : vector<16x16xf32>
    %70 = tpu.matmul %67, %68, %cst_25 {dimension_numbers = #tpu.dot_dimension_numbers<[1], [1], [0], [0], [0, 0, 1, 0], [], []>} : vector<16x8xf32>, vector<16x8xf32>, vector<16x16xf32> -> vector<16x16xf32>
    %cst_26 = arith.constant -1.000000e+30 : f32
    %71 = vector.broadcast %cst_26 : f32 to vector<16x16xf32>
    %72 = arith.select %26, %70, %71 : vector<16x16xi1>, vector<16x16xf32>
    %cst_27 = arith.constant dense<0xFF800000> : vector<16xf32>
    %73 = vector.multi_reduction <maximumf>, %72, %cst_27 [1] : vector<16x16xf32> to vector<16xf32>
    %74 = vector.shape_cast %73 : vector<16xf32> to vector<16x1xf32>
    %75 = vector.broadcast %74 : vector<16x1xf32> to vector<16x16xf32>
    %76 = arith.subf %72, %75 : vector<16x16xf32>
    %77 = math.exp %76 : vector<16x16xf32>
    %cst_28 = arith.constant dense<0.000000e+00> : vector<16xf32>
    %78 = vector.multi_reduction <add>, %77, %cst_28 [1] : vector<16x16xf32> to vector<16xf32>
    %79 = vector.shape_cast %78 : vector<16xf32> to vector<16x1xf32>
    %cst_29 = arith.constant dense<0.000000e+00> : vector<16x8xf32>
    %80 = tpu.matmul %77, %69, %cst_29 {dimension_numbers = #tpu.dot_dimension_numbers<[1], [0], [0], [1], [0, 0, 1, 1], [], []>} : vector<16x16xf32>, vector<16x8xf32>, vector<16x8xf32> -> vector<16x8xf32>
    %81 = tpu.reciprocal %79 {approx = true} : vector<16x1xf32> -> vector<16x1xf32>
    %82 = vector.broadcast %81 : vector<16x1xf32> to vector<16x8xf32>
    %83 = arith.mulf %80, %82 : vector<16x8xf32>
    %c16 = arith.constant 16 : index
    %c0_30 = arith.constant 0 : index
    %84 = vector.load %arg3[%c16, %c0_30] : memref<32x32xf32, #tpu.memory_space<vmem>>, vector<8x32xf32>
    %cst_31 = arith.constant dense<0.000000e+00> : vector<16x32xf32>
    %85 = tpu.matmul %83, %84, %cst_31 {dimension_numbers = #tpu.dot_dimension_numbers<[1], [0], [0], [1], [0, 0, 1, 1], [], []>} : vector<16x8xf32>, vector<8x32xf32>, vector<16x32xf32> -> vector<16x32xf32>
    %86 = arith.addf %66, %85 : vector<16x32xf32>
    %87 = vector.extract_strided_slice %21 {offsets = [0, 24], sizes = [16, 8], strides = [1, 1]} : vector<16x96xf32> to vector<16x8xf32>
    %88 = vector.extract_strided_slice %21 {offsets = [0, 56], sizes = [16, 8], strides = [1, 1]} : vector<16x96xf32> to vector<16x8xf32>
    %89 = vector.extract_strided_slice %21 {offsets = [0, 88], sizes = [16, 8], strides = [1, 1]} : vector<16x96xf32> to vector<16x8xf32>
    %cst_32 = arith.constant dense<0.000000e+00> : vector<16x16xf32>
    %90 = tpu.matmul %87, %88, %cst_32 {dimension_numbers = #tpu.dot_dimension_numbers<[1], [1], [0], [0], [0, 0, 1, 0], [], []>} : vector<16x8xf32>, vector<16x8xf32>, vector<16x16xf32> -> vector<16x16xf32>
    %cst_33 = arith.constant -1.000000e+30 : f32
    %91 = vector.broadcast %cst_33 : f32 to vector<16x16xf32>
    %92 = arith.select %26, %90, %91 : vector<16x16xi1>, vector<16x16xf32>
    %cst_34 = arith.constant dense<0xFF800000> : vector<16xf32>
    %93 = vector.multi_reduction <maximumf>, %92, %cst_34 [1] : vector<16x16xf32> to vector<16xf32>
    %94 = vector.shape_cast %93 : vector<16xf32> to vector<16x1xf32>
    %95 = vector.broadcast %94 : vector<16x1xf32> to vector<16x16xf32>
    %96 = arith.subf %92, %95 : vector<16x16xf32>
    %97 = math.exp %96 : vector<16x16xf32>
    %cst_35 = arith.constant dense<0.000000e+00> : vector<16xf32>
    %98 = vector.multi_reduction <add>, %97, %cst_35 [1] : vector<16x16xf32> to vector<16xf32>
    %99 = vector.shape_cast %98 : vector<16xf32> to vector<16x1xf32>
    %cst_36 = arith.constant dense<0.000000e+00> : vector<16x8xf32>
    %100 = tpu.matmul %97, %89, %cst_36 {dimension_numbers = #tpu.dot_dimension_numbers<[1], [0], [0], [1], [0, 0, 1, 1], [], []>} : vector<16x16xf32>, vector<16x8xf32>, vector<16x8xf32> -> vector<16x8xf32>
    %101 = tpu.reciprocal %99 {approx = true} : vector<16x1xf32> -> vector<16x1xf32>
    %102 = vector.broadcast %101 : vector<16x1xf32> to vector<16x8xf32>
    %103 = arith.mulf %100, %102 : vector<16x8xf32>
    %c24 = arith.constant 24 : index
    %c0_37 = arith.constant 0 : index
    %104 = vector.load %arg3[%c24, %c0_37] : memref<32x32xf32, #tpu.memory_space<vmem>>, vector<8x32xf32>
    %cst_38 = arith.constant dense<0.000000e+00> : vector<16x32xf32>
    %105 = tpu.matmul %103, %104, %cst_38 {dimension_numbers = #tpu.dot_dimension_numbers<[1], [0], [0], [1], [0, 0, 1, 1], [], []>} : vector<16x8xf32>, vector<8x32xf32>, vector<16x32xf32> -> vector<16x32xf32>
    %106 = arith.addf %86, %105 : vector<16x32xf32>
    %c0_39 = arith.constant 0 : index
    %c0_40 = arith.constant 0 : index
    %107 = vector.load %arg4[%c0_39, %c0_40] : memref<16x32xf32, #tpu.memory_space<vmem>>, vector<16x32xf32>
    tpu.vector_store %arg4[%c0_39, %c0_40], %106 {strides = array<i32>} : memref<16x32xf32, #tpu.memory_space<vmem>>, vector<16x32xf32>,
    return
  }
}

</mosaic_0001>

<bundles_post_ra>
// kernel: tpu_custom_call.1
= control target key start
LH: loop header
LB: loop body
LE: loop exit
PB: predicated region body
PF: predicated region fallthrough
CT: control target
= control target key end

     0   :  { %9 = vsyncpa [#allocation3], 0  ;;  %s1126_s0 = inlined_call_operand.hbm [shape: f32[16,32], index: 0, kind: input, shape index: {}]   ;;  %s1127_s1 = inlined_call_operand.hbm [shape: f32[32,96], index: 1, kind: input, shape index: {}]   ;;  %s1128_s2 = inlined_call_operand.vmem [shape: f32[1,96], index: 2, kind: input, shape index: {}]   ;;  %s1129_s3 = inlined_call_operand.hbm [shape: f32[32,32], index: 3, kind: input, shape index: {}]   ;;  %s1130_s4 = inlined_call_operand.hbm [shape: f32[16,32], index: 4, kind: output, shape index: {}]  }
   0x1   :  { %10 = vsyncpa [#allocation6], 0 }
   0x2   :  { %11 = vsyncpa [#allocation4], 0  ;;  %s29_s17 = sshll.u32 %s1127_s1, 4  ;;  %s921_s18 = smov [#allocation5]   ;;  %s30_s17 = int_to_ptr.hbm [resolvable:$true] %s29_s17 }
   0x3   :  { %s31_s19 = sshll.u32 %s921_s18, 4  ;;  %s16_s22 = sshll.u32 %s1126_s0, 4  ;;  %s32_s19 = int_to_ptr.vmem [resolvable:$true] %s31_s19  ;;  %s17_s22 = int_to_ptr.hbm [resolvable:$true] %s16_s22 }
   0x4   :  { %s922_s23 = smov 128   ;;  %s923_s24 = smov 8  }
   0x5   :  { %37 = dma.hbm_to_vmem [thread:$0]  %s30_s17, 512, %s32_s19, [#allocation6], %s922_s23, %s922_s23, %s923_s24  }
   0x6   :  { %s924_s25 = smov [#allocation2]   ;;  %s44_s1 = sshll.u32 %s1129_s3, 4  ;;  %s45_s1 = int_to_ptr.hbm [resolvable:$true] %s44_s1 }
   0x7   :  { %s18_s26 = sshll.u32 %s924_s25, 4  ;;  %s925_s0 = smov [#allocation7]   ;;  %s19_s26 = int_to_ptr.vmem [resolvable:$true] %s18_s26 }
   0x8   :  { %24 = dma.hbm_to_vmem [thread:$0]  %s17_s22, 256, %s19_s26, [#allocation3], %s922_s23, %s922_s23, %s923_s24  }
   0x9   :  { %s46_s29 = sshll.u32 %s925_s0, 4  ;;  %s47_s29 = int_to_ptr.vmem [resolvable:$true] %s46_s29 }
   0xa   :  { %52 = dma.hbm_to_vmem [thread:$0]  %s45_s1, 512, %s47_s29, [#allocation6], %s922_s23, %s922_s23, %s923_s24  }
   0xb   :  { %915 = dma.done.wait [#allocation3], 256  }
   0xc   :  { %916 = vsyncadd [#allocation3], 4294967040 }
   0xd   :  { %917 = dma.done.wait [#allocation6], 1024  }
   0xe   :  { %918 = vsyncadd [#allocation6], 4294966272  ;;  %vm67_vm0 = vcmask 261120   ;;  %v982_v0 = vld [vmem:[#allocation2] sm:$0xff]  ;;  %v986_v2 = vld [vmem:[#allocation2 + $0x8] sm:$0xff]  ;;  %v926_v4 = vmov 32.0   ;;  %v156_v58 = vlaneseq }
   0xf   :  { %v68_v1 = vsel %vm67_vm0, %v982_v0, 0.0  ;;  %v71_v3 = vsel %vm67_vm0, %v986_v2, 0.0  ;;  %781 = vrcp.f32 %v926_v4  ;;  %v122_v21 = vld [vmem:[#allocation5 + $0x18] sm:$0xff]  ;;  %v121_v22 = vld [vmem:[#allocation5 + $0x10] sm:$0xff]  ;;  %v120_v23 = vld [vmem:[#allocation5 + $0x8] sm:$0xff]  ;;  %s927_s5 = smov 96  }
  0x10   :  { %69 = vadd.xlane.f32.xlu0 %v68_v1  ;;  %145 = vmatpush.msra.mxu0 %v122_v21  ;;  %v119_v24 = vld [vmem:[#allocation5] sm:$0xff]  ;;  %v780_v48 = vld [vmem:[%s1128_s2] ss:$0 sm:$0xff]  ;;  %s928_s6 = smov 64   ;;  %s929_s7 = smov 88   ;;  %vm171_vm8 = vcmask 64512  }
  0x11   :  { %s930_s2 = smov 120   ;;  %v157_v59 = vshrl.u32 %v156_v58, 7  ;;  %v160_v60 = vand.u32 127, %v156_v58  ;;  %vm205_vm10 = vcmask 130048   ;;  %s931_s8 = smov 56  }
  0x12   :  { %146 = vmatpush.msra.mxu0 %v121_v22  ;;  %s932_s9 = smov 112   ;;  %s933_s10 = smov 72  }
  0x13   :  { %v161_v61 = vxor.u32 %v160_v60, %v157_v59  ;;  %v158_v63 = vadd.s32 8, %v157_v59  ;;  %s934_s11 = smov 104   ;;  %s935_s12 = smov 80  }
  0x14   :  { %147 = vmatpush.msra.mxu0 %v120_v23  ;;  %v393_v23 = vld [vmem:[#allocation7 + $0x8] sm:$0xff]  ;;  %s936_s13 = smov 48   ;;  %s937_s14 = smov 40  }
  0x15   :  { %v782_v5 = vpop.eup %781  ;;  %vm1020_vm9 = vcmp.lt.s32.totalorder %v161_v61, 8  ;;  %s938_s15 = smov [#allocation8]   ;;  %s693_s19 = sshll.u32 %s1130_s4, 4  ;;  %s694_s19 = int_to_ptr.hbm [resolvable:$true] %s693_s19 }
  0x16   :  { %v75_v6 = vmul.f32 32.0, %v782_v5  ;;  %vm79_vm1 = vweird.f32 %v782_v5  ;;  %148 = vmatpush.msra.mxu0 %v119_v24  ;;  %s691_s16 = sshll.u32 %s938_s15, 4  ;;  %s692_s16 = int_to_ptr.vmem [resolvable:$true] %s691_s16 }
  0x18   :  { %72 = vadd.xlane.f32.xlu0 %v71_v3  ;;  %v76_v7 = vsub.f32 1.0, %v75_v6  ;;  %415 = vmatpush.msrb.mxu0 %v393_v23 }
  0x1a   :  { %v77_v8 = vmul.f32 %v782_v5, %v76_v7 }
  0x1c   :  { %v78_v9 = vadd.f32 %v782_v5, %v77_v8 }
  0x1e   :  { %v80_v10 = vsel %vm79_vm1, %v782_v5, %v78_v9  ;;  %v162_v5 = vxor.u32 %v160_v60, %v158_v63 }
  0x20   :  { %vm1027_vm11 = vcmp.lt.s32.totalorder %v162_v5, 8 }
  0x83   :  { %v70_v11 = vpop.xlane.xlu0 %69 }
  0x84   :  { %v81_v12 = vmul.f32 %v80_v10, %v70_v11 }
  0x86   :  { %v83_v13 = vsub.f32 %v982_v0, %v81_v12 }
  0x88   :  { %v85_v14 = vmul.f32 %v83_v13, %v83_v13 }
  0x8a   :  { %v87_v15 = vsel %vm67_vm0, %v85_v14, 0.0 }
  0x8b   :  { %88 = vadd.xlane.f32.xlu1 %v87_v15  ;;  %v73_v16 = vpop.xlane.xlu0 %72 }
  0x8c   :  { %v82_v17 = vmul.f32 %v80_v10, %v73_v16 }
  0x8e   :  { %v84_v18 = vsub.f32 %v986_v2, %v82_v17 }
  0x90   :  { %v86_v19 = vmul.f32 %v84_v18, %v84_v18 }
  0x92   :  { %v90_v20 = vsel %vm67_vm0, %v86_v19, 0.0 }
  0x93   :  { %91 = vadd.xlane.f32.xlu1 %v90_v20 }
  0xfe   :  { %v89_v25 = vpop.xlane.xlu1 %88 }
  0xff   :  { %v93_v26 = vmul.f32 %v89_v25, %v80_v10 }
 0x101   :  { %v95_v27 = vadd.f32 1e-12, %v93_v26 }
 0x103   :  { %783 = vrsqrt.f32 %v95_v27  ;;  %vm103_vm3 = vweird.f32 %v95_v27 }
 0x106   :  { %v92_v28 = vpop.xlane.xlu1 %91 }
 0x107   :  { %v94_v29 = vmul.f32 %v92_v28, %v80_v10  ;;  %v263_v10 = vld [vmem:[#allocation7] sm:$0xff] }
 0x108   :  { %741 = vmatpush.msra.mxu3 %v263_v10 }
 0x109   :  { %v784_v30 = vpop.eup %783  ;;  %v96_v31 = vadd.f32 1e-12, %v94_v29 }
 0x10a   :  { %v98_v32 = vmul.f32 %v784_v30, %v95_v27  ;;  %vm104_vm2 = vweird.f32 %v784_v30 }
 0x10b   :  { %785 = vrsqrt.f32 %v96_v31  ;;  %vm105_vm4 = vmor %vm103_vm3, %vm104_vm2  ;;  %vm113_vm6 = vweird.f32 %v96_v31 }
 0x10c   :  { %v99_v33 = vmul.f32 %v784_v30, %v98_v32 }
 0x10e   :  { %v100_v34 = vmul.f32 0.5, %v99_v33 }
 0x110   :  { %v101_v35 = vsub.f32 1.5, %v100_v34 }
 0x111   :  { %v786_v36 = vpop.eup %785 }
 0x112   :  { %v108_v37 = vmul.f32 %v786_v36, %v96_v31  ;;  %v102_v38 = vmul.f32 %v784_v30, %v101_v35  ;;  %vm114_vm5 = vweird.f32 %v786_v36 }
 0x113   :  { %vm115_vm7 = vmor %vm113_vm6, %vm114_vm5 }
 0x114   :  { %v109_v39 = vmul.f32 %v786_v36, %v108_v37  ;;  %v106_v40 = vsel %vm105_vm4, %v784_v30, %v102_v38 }
 0x115   :  { %v117_v41 = vmul.f32 %v106_v40, %v83_v13 }
 0x116   :  { %v110_v42 = vmul.f32 0.5, %v109_v39 }
 0x117   :  { %707 = vmatmul.msk.f32.vlgmr.msra.gmra.mxu0 %vm67_vm0, %v117_v41 }
 0x118   :  { %v111_v43 = vsub.f32 1.5, %v110_v42 }
 0x11a   :  { %v112_v44 = vmul.f32 %v786_v36, %v111_v43 }
 0x11c   :  { %v116_v45 = vsel %vm115_vm7, %v786_v36, %v112_v44 }
 0x11d   :  { %v118_v46 = vmul.f32 %v116_v45, %v84_v18 }
 0x11f   :  { %708 = vmatmul.msk.f32.gmra.mxu0 %vm67_vm0, %v118_v46 }
 0x194   :  { %v150_v47 = vpop.f32.mrf.mxu0 }
 0x195   :  { %v1002_v51 = vadd.f32 %v780_v48, %v150_v47 }
 0x19c   :  { %v153_v49 = vpop.f32.mrf.mxu0 }
 0x19d   :  { %v999_v50 = vadd.f32 %v780_v48, %v153_v49 }
 0x19f   :  { %169 = vrot.lane.b32.xlu2 %v999_v50, %s927_s5  ;;  %v1007_v52 = vpack.i.bf16 %v1002_v51, %v999_v50 }
 0x1a7   :  { %167 = vrot.lane.b32.xlu2 %v1002_v51, %s927_s5 }
 0x1af   :  { %761 = vrot.lane.b32.xlu2 %v1007_v52, %s928_s6 }
 0x1b7   :  { %299 = vrot.lane.b32.xlu2 %v1002_v51, %s929_s7 }
 0x1bf   :  { %297 = vrot.lane.b32.xlu2 %v999_v50, %s930_s2 }
 0x1f9   :  { %v170_v53 = vpop.permute.xlu2 %169 }
 0x1fa   :  { %709 = vmatpush.xpose.msk.msra.mxu1 %vm171_vm8, %v170_v53 }
 0x201   :  { %v168_v54 = vpop.permute.xlu2 %167 }
 0x202   :  { %710 = vmatpush.xpose.msk.msra.mxu1 %vm171_vm8, %v168_v54 }
 0x205   :  { %711 = vmatmul.msk.f32.vlgmr.msra.gmra.mxu1 %vm171_vm8, %v1002_v51 }
 0x209   :  { %v762_v55 = vpop.permute.xlu2 %761 }
 0x20a   :  { %v763_v56 = vunpack.i.l.bf16 %v762_v55  ;;  %v764_v57 = vunpack.i.h.bf16 %v762_v55 }
 0x20c   :  { %250 = vmatpush.msra.mxu2 %v763_v56 }
 0x20d   :  { %712 = vmatmul.msk.f32.gmra.mxu1 %vm171_vm8, %v999_v50 }
 0x20e   :  { %251 = vmatpush.msra.mxu2 %v764_v57 }
 0x210   :  { %285 = vmatpush.msrb.mxu2 %v263_v10 }
 0x211   :  { %v300_v22 = vpop.permute.xlu2 %299 }
 0x219   :  { %v298_v24 = vpop.permute.xlu2 %297 }
 0x282   :  { %v197_v1 = vpop.f32.mrf.mxu1 }
 0x283   :  { %v203_v3 = vsel %vm1020_vm9, %v197_v1, -1e+30 }
 0x284   :  { %v206_v4 = vsel %vm205_vm10, %v203_v3, -inf }
 0x285   :  { %207 = vmax.xlane.f32.xlu0 %v206_v4 }
 0x28a   :  { %v200_v7 = vpop.f32.mrf.mxu1 }
 0x28b   :  { %v204_v8 = vsel %vm1027_vm11, %v200_v7, -1e+30 }
 0x28c   :  { %v209_v9 = vsel %vm205_vm10, %v204_v8, -inf }
 0x28d   :  { %210 = vmax.xlane.f32.xlu1 %v209_v9 }
 0x2a6   :  { %301 = vrot.lane.b32.xlu1 %v999_v50, %s929_s7 }
 0x2f8   :  { %v208_v11 = vpop.xlane.xlu0 %207 }
 0x2f9   :  { %v212_v12 = vsub.f32 %v203_v3, %v208_v11 }
 0x2fb   :  { %v214_v13 = vmul.f32 1.442695, %v212_v12 }
 0x2fd   :  { %787 = vpow2.f32 %v214_v13 }
 0x300   :  { %v211_v14 = vpop.xlane.xlu1 %210 }
 0x301   :  { %v213_v15 = vsub.f32 %v204_v8, %v211_v14 }
 0x303   :  { %v788_v16 = vpop.eup %787  ;;  %v216_v17 = vmul.f32 1.442695, %v213_v15 }
 0x304   :  { %713 = vmatmul.msk.f32.vlgmr.msra.gmra.mxu2 %vm205_vm10, %v788_v16  ;;  %v218_v18 = vsel %vm205_vm10, %v788_v16, 0.0 }
 0x305   :  { %789 = vpow2.f32 %v216_v17  ;;  %219 = vadd.xlane.f32.xlu2 %v218_v18 }
 0x30b   :  { %v790_v19 = vpop.eup %789 }
 0x30c   :  { %714 = vmatmul.msk.f32.gmra.mxu2 %vm205_vm10, %v790_v19  ;;  %v221_v20 = vsel %vm205_vm10, %v790_v19, 0.0 }
 0x30d   :  { %222 = vadd.xlane.f32.xlu0 %v221_v20 }
 0x318   :  { %v302_v21 = vpop.permute.xlu1 %301 }
 0x319   :  { %717 = vmatpush.xpose.msk.msrb.mxu3 %vm171_vm8, %v302_v21 }
 0x31d   :  { %766 = vrot.lane.b32.xlu2 %v1007_v52, %s931_s8  ;;  %718 = vmatpush.xpose.msk.msrb.mxu3 %vm171_vm8, %v300_v22 }
 0x321   :  { %295 = vrot.lane.b32.xlu0 %v1002_v51, %s930_s2 }
 0x325   :  { %425 = vrot.lane.b32.xlu2 %v1002_v51, %s932_s9 }
 0x32d   :  { %561 = vrot.lane.b32.xlu2 %v999_v50, %s933_s10 }
 0x335   :  { %559 = vrot.lane.b32.xlu2 %v1002_v51, %s933_s10 }
 0x33d   :  { %557 = vrot.lane.b32.xlu2 %v999_v50, %s934_s11 }
 0x378   :  { %v220_v25 = vpop.xlane.xlu2 %219 }
 0x379   :  { %791 = vrcp.f32 %v220_v25 }
 0x37f   :  { %v792_v30 = vpop.eup %791 }
 0x380   :  { %v767_v26 = vpop.permute.xlu2 %766  ;;  %v223_v29 = vpop.xlane.xlu0 %222 }
 0x381   :  { %v768_v27 = vunpack.i.l.bf16 %v767_v26  ;;  %v769_v28 = vunpack.i.h.bf16 %v767_v26  ;;  %793 = vrcp.f32 %v223_v29 }
 0x383   :  { %380 = vmatpush.msra.mxu2 %v768_v27 }
 0x385   :  { %381 = vmatpush.msra.mxu2 %v769_v28 }
 0x387   :  { %v253_v31 = vpop.f32.mrf.mxu2  ;;  %v794_v34 = vpop.eup %793 }
 0x388   :  { %v261_v32 = vmul.f32 %v792_v30, %v253_v31  ;;  %v426_v33 = vpop.permute.xlu2 %425 }
 0x38a   :  { %715 = vmatmul.msk.f32.vlgmr.msrb.gmra.mxu2 %vm171_vm8, %v261_v32 }
 0x38f   :  { %v256_v35 = vpop.f32.mrf.mxu2 }
 0x390   :  { %v262_v36 = vmul.f32 %v794_v34, %v256_v35  ;;  %v562_v37 = vpop.permute.xlu2 %561 }
 0x391   :  { %733 = vmatpush.xpose.msk.msra.mxu0 %vm171_vm8, %v562_v37 }
 0x392   :  { %716 = vmatmul.msk.f32.vlgmr.msra.gmra.mxu3 %vm171_vm8, %v262_v36  ;;  %v523_v36 = vld [vmem:[#allocation7 + $0x10] sm:$0xff] }
 0x393   :  { %v296_v39 = vpop.permute.xlu0 %295  ;;  %545 = vmatpush.msrb.mxu2 %v523_v36 }
 0x398   :  { %v560_v38 = vpop.permute.xlu2 %559 }
 0x399   :  { %734 = vmatpush.xpose.msk.msra.mxu0 %vm171_vm8, %v560_v38 }
 0x39a   :  { %719 = vmatmul.msk.f32.vlgmr.msrb.gmra.mxu3 %vm171_vm8, %v296_v39 }
 0x3a0   :  { %v558_v14 = vpop.permute.xlu2 %557 }
 0x3a2   :  { %720 = vmatmul.msk.f32.gmra.mxu3 %vm171_vm8, %v298_v24 }
 0x40d   :  { %v1076_v1 = vpop.f32.mrf.mxu2 }
 0x415   :  { %v290_v40 = vpop.f32.mrf.mxu3 }
 0x416   :  { %v294_v16 = vadd.f32 %v290_v40, %v986_v2 }
 0x41d   :  { %v328_v41 = vpop.f32.mrf.mxu3 }
 0x41e   :  { %v334_v42 = vsel %vm1020_vm9, %v328_v41, -1e+30 }
 0x41f   :  { %v336_v43 = vsel %vm205_vm10, %v334_v42, -inf }
 0x420   :  { %337 = vmax.xlane.f32.xlu1 %v336_v43 }
 0x425   :  { %v331_v44 = vpop.f32.mrf.mxu3 }
 0x426   :  { %v335_v45 = vsel %vm1027_vm11, %v331_v44, -1e+30 }
 0x427   :  { %v339_v46 = vsel %vm205_vm10, %v335_v45, -inf }
 0x428   :  { %340 = vmax.xlane.f32.xlu0 %v339_v46 }
 0x439   :  { %431 = vrot.lane.b32.xlu1 %v999_v50, %s935_s12 }
 0x43c   :  { %429 = vrot.lane.b32.xlu0 %v1002_v51, %s935_s12 }
 0x493   :  { %v338_v47 = vpop.xlane.xlu1 %337 }
 0x494   :  { %v342_v48 = vsub.f32 %v334_v42, %v338_v47 }
 0x496   :  { %v344_v49 = vmul.f32 1.442695, %v342_v48 }
 0x498   :  { %795 = vpow2.f32 %v344_v49 }
 0x49b   :  { %v341_v53 = vpop.xlane.xlu0 %340 }
 0x49c   :  { %v343_v54 = vsub.f32 %v335_v45, %v341_v53 }
 0x49e   :  { %v796_v55 = vpop.eup %795  ;;  %v346_v56 = vmul.f32 1.442695, %v343_v54 }
 0x49f   :  { %721 = vmatmul.msk.f32.vlgmr.msra.gmra.mxu2 %vm205_vm10, %v796_v55  ;;  %v348_v57 = vsel %vm205_vm10, %v796_v55, 0.0 }
 0x4a0   :  { %797 = vpow2.f32 %v346_v56  ;;  %349 = vadd.xlane.f32.xlu1 %v348_v57 }
 0x4a6   :  { %v798_v58 = vpop.eup %797 }
 0x4a7   :  { %722 = vmatmul.msk.f32.gmra.mxu2 %vm205_vm10, %v798_v58  ;;  %v351_v59 = vsel %vm205_vm10, %v798_v58, 0.0  ;;  %v653_v58 = vld [vmem:[#allocation7 + $0x18] sm:$0xff] }
 0x4a8   :  { %352 = vadd.xlane.f32.xlu0 %v351_v59 }
 0x4ab   :  { %v432_v60 = vpop.permute.xlu1 %431 }
 0x4ac   :  { %725 = vmatpush.xpose.msk.msrb.mxu1 %vm171_vm8, %v432_v60 }
 0x4ae   :  { %v430_v61 = vpop.permute.xlu0 %429 }
 0x4b0   :  { %726 = vmatpush.xpose.msk.msrb.mxu1 %vm171_vm8, %v430_v61 }
 0x4b3   :  { %727 = vmatmul.msk.f32.vlgmr.msrb.gmra.mxu1 %vm171_vm8, %v426_v33 }
 0x4b9   :  { %555 = vrot.lane.b32.xlu1 %v1002_v51, %s934_s11 }
 0x4bc   :  { %427 = vrot.lane.b32.xlu0 %v999_v50, %s932_s9 }
 0x513   :  { %v350_v63 = vpop.xlane.xlu1 %349 }
 0x514   :  { %799 = vrcp.f32 %v350_v63 }
 0x51a   :  { %v800_v4 = vpop.eup %799 }
 0x51b   :  { %v353_v3 = vpop.xlane.xlu0 %352 }
 0x51c   :  { %801 = vrcp.f32 %v353_v3 }
 0x522   :  { %v383_v5 = vpop.f32.mrf.mxu2  ;;  %v802_v8 = vpop.eup %801 }
 0x523   :  { %v391_v7 = vmul.f32 %v800_v4, %v383_v5 }
 0x525   :  { %723 = vmatmul.msk.f32.vlgmr.msrb.gmra.mxu0 %vm171_vm8, %v391_v7 }
 0x52a   :  { %v386_v9 = vpop.f32.mrf.mxu2 }
 0x52b   :  { %v392_v10 = vmul.f32 %v802_v8, %v386_v9  ;;  %v556_v13 = vpop.permute.xlu1 %555 }
 0x52d   :  { %724 = vmatmul.msk.f32.gmra.mxu0 %vm171_vm8, %v392_v10 }
 0x52e   :  { %v428_v51 = vpop.permute.xlu0 %427 }
 0x52f   :  { %728 = vmatmul.msk.f32.gmra.mxu1 %vm171_vm8, %v428_v51 }
 0x530   :  { %v458_v50 = vpop.f32.mrf.mxu1 }
 0x531   :  { %v464_v11 = vsel %vm1020_vm9, %v458_v50, -1e+30  ;;  %v293_v50 = vadd.f32 %v1076_v1, %v982_v0 }
 0x532   :  { %v466_v12 = vsel %vm205_vm10, %v464_v11, -inf }
 0x533   :  { %467 = vmax.xlane.f32.xlu0 %v466_v12 }
 0x535   :  { %735 = vmatmul.msk.f32.vlgmr.msra.gmra.mxu0 %vm171_vm8, %v556_v13 }
 0x53d   :  { %736 = vmatmul.msk.f32.gmra.mxu0 %vm171_vm8, %v558_v14 }
 0x547   :  { %771 = vrot.lane.b32.xlu0 %v1007_v52, %s936_s13 }
 0x5a2   :  { %v1087_v15 = vpop.f32.mrf.mxu0 }
 0x5a3   :  { %v423_v12 = vadd.f32 %v1087_v15, %v293_v50 }
 0x5a6   :  { %v468_v20 = vpop.xlane.xlu0 %467 }
 0x5a7   :  { %v472_v23 = vsub.f32 %v464_v11, %v468_v20 }
 0x5a9   :  { %v474_v26 = vmul.f32 1.442695, %v472_v23 }
 0x5aa   :  { %v420_v17 = vpop.f32.mrf.mxu0 }
 0x5ab   :  { %v1090_v18 = vadd.f32 %v420_v17, %v294_v16  ;;  %803 = vpow2.f32 %v474_v26 }
 0x5ac   :  { %v461_v19 = vpop.f32.mrf.mxu1 }
 0x5ad   :  { %v465_v21 = vsel %vm1027_vm11, %v461_v19, -1e+30 }
 0x5ae   :  { %v469_v22 = vsel %vm205_vm10, %v465_v21, -inf }
 0x5af   :  { %470 = vmax.xlane.f32.xlu1 %v469_v22 }
 0x5b1   :  { %v804_v33 = vpop.eup %803 }
 0x5b2   :  { %v588_v24 = vpop.f32.mrf.mxu0  ;;  %v478_v62 = vsel %vm205_vm10, %v804_v33, 0.0 }
 0x5b3   :  { %v594_v25 = vsel %vm1020_vm9, %v588_v24, -1e+30 }
 0x5b4   :  { %v596_v27 = vsel %vm205_vm10, %v594_v25, -inf }
 0x5b5   :  { %597 = vmax.xlane.f32.xlu2 %v596_v27 }
 0x5b9   :  { %v772_v2 = vpop.permute.xlu0 %771 }
 0x5ba   :  { %v773_v28 = vunpack.i.l.bf16 %v772_v2  ;;  %v591_v29 = vpop.f32.mrf.mxu0  ;;  %v774_v31 = vunpack.i.h.bf16 %v772_v2 }
 0x5bb   :  { %v595_v30 = vsel %vm1027_vm11, %v591_v29, -1e+30 }
 0x5bc   :  { %510 = vmatpush.msra.mxu3 %v773_v28  ;;  %v599_v32 = vsel %vm205_vm10, %v595_v30, -inf }
 0x5bd   :  { %600 = vmax.xlane.f32.xlu1 %v599_v32 }
 0x5be   :  { %511 = vmatpush.msra.mxu3 %v774_v31 }
 0x5bf   :  { %729 = vmatmul.msk.f32.vlgmr.msra.gmra.mxu3 %vm205_vm10, %v804_v33 }
 0x5c0   :  { %675 = vmatpush.msrb.mxu3 %v653_v58 }
 0x5c5   :  { %479 = vadd.xlane.f32.xlu1 %v478_v62 }
 0x5cd   :  { %776 = vrot.lane.b32.xlu2 %v1007_v52, %s937_s14 }
 0x622   :  { %v471_v34 = vpop.xlane.xlu1 %470 }
 0x623   :  { %v473_v35 = vsub.f32 %v465_v21, %v471_v34 }
 0x625   :  { %v476_v6 = vmul.f32 1.442695, %v473_v35 }
 0x627   :  { %805 = vpow2.f32 %v476_v6 }
 0x628   :  { %v598_v37 = vpop.xlane.xlu2 %597 }
 0x629   :  { %v602_v38 = vsub.f32 %v594_v25, %v598_v37 }
 0x62b   :  { %v604_v39 = vmul.f32 1.442695, %v602_v38 }
 0x62d   :  { %v806_v40 = vpop.eup %805  ;;  %807 = vpow2.f32 %v604_v39 }
 0x62e   :  { %730 = vmatmul.msk.f32.gmra.mxu3 %vm205_vm10, %v806_v40  ;;  %v481_v41 = vsel %vm205_vm10, %v806_v40, 0.0 }
 0x62f   :  { %482 = vadd.xlane.f32.xlu0 %v481_v41 }
 0x630   :  { %v777_v42 = vpop.permute.xlu2 %776  ;;  %v601_v43 = vpop.xlane.xlu1 %600 }
 0x631   :  { %v778_v44 = vunpack.i.l.bf16 %v777_v42  ;;  %v603_v52 = vsub.f32 %v595_v30, %v601_v43  ;;  %v779_v46 = vunpack.i.h.bf16 %v777_v42 }
 0x633   :  { %v808_v45 = vpop.eup %807  ;;  %v606_v47 = vmul.f32 1.442695, %v603_v52  ;;  %640 = vmatpush.msra.mxu1 %v778_v44 }
 0x634   :  { %v608_v48 = vsel %vm205_vm10, %v808_v45, 0.0 }
 0x635   :  { %809 = vpow2.f32 %v606_v47  ;;  %641 = vmatpush.msra.mxu1 %v779_v46  ;;  %609 = vadd.xlane.f32.xlu1 %v608_v48 }
 0x636   :  { %737 = vmatmul.msk.f32.vlgmr.msra.gmra.mxu1 %vm205_vm10, %v808_v45 }
 0x638   :  { %v480_v49 = vpop.xlane.xlu1 %479 }
 0x639   :  { %811 = vrcp.f32 %v480_v49 }
 0x63b   :  { %v810_v53 = vpop.eup %809 }
 0x63c   :  { %v611_v54 = vsel %vm205_vm10, %v810_v53, 0.0 }
 0x63d   :  { %612 = vadd.xlane.f32.xlu1 %v611_v54 }
 0x63e   :  { %738 = vmatmul.msk.f32.gmra.mxu1 %vm205_vm10, %v810_v53 }
 0x63f   :  { %v812_v55 = vpop.eup %811 }
 0x642   :  { %v513_v56 = vpop.f32.mrf.mxu3 }
 0x643   :  { %v521_v57 = vmul.f32 %v812_v55, %v513_v56 }
 0x645   :  { %731 = vmatmul.msk.f32.vlgmr.msrb.gmra.mxu2 %vm171_vm8, %v521_v57 }
 0x6a2   :  { %v483_v59 = vpop.xlane.xlu0 %482 }
 0x6a3   :  { %813 = vrcp.f32 %v483_v59 }
 0x6a8   :  { %v610_v60 = vpop.xlane.xlu1 %609 }
 0x6a9   :  { %815 = vrcp.f32 %v610_v60  ;;  %v814_v61 = vpop.eup %813 }
 0x6af   :  { %v816_v5 = vpop.eup %815 }
 0x6b0   :  { %v613_v3 = vpop.xlane.xlu1 %612 }
 0x6b1   :  { %v516_v63 = vpop.f32.mrf.mxu3  ;;  %817 = vrcp.f32 %v613_v3 }
 0x6b2   :  { %v522_v4 = vmul.f32 %v814_v61, %v516_v63 }
 0x6b3   :  { %v643_v7 = vpop.f32.mrf.mxu1 }
 0x6b4   :  { %v651_v8 = vmul.f32 %v816_v5, %v643_v7  ;;  %732 = vmatmul.msk.f32.gmra.mxu2 %vm171_vm8, %v522_v4 }
 0x6b6   :  { %739 = vmatmul.msk.f32.vlgmr.msrb.gmra.mxu3 %vm171_vm8, %v651_v8 }
 0x6b7   :  { %v818_v9 = vpop.eup %817 }
 0x6bb   :  { %v646_v10 = vpop.f32.mrf.mxu1 }
 0x6bc   :  { %v652_v51 = vmul.f32 %v818_v9, %v646_v10 }
 0x6be   :  { %740 = vmatmul.msk.f32.gmra.mxu3 %vm171_vm8, %v652_v51 }
 0x6c8   :  { %v547_v11 = vpop.f32.mrf.mxu2 }
 0x6c9   :  { %v553_v13 = vadd.f32 %v547_v11, %v423_v12 }
 0x737   :  { %v550_v17 = vpop.f32.mrf.mxu2 }
 0x738   :  { %v554_v19 = vadd.f32 %v550_v17, %v1090_v18 }
 0x739   :  { %v677_v14 = vpop.f32.mrf.mxu3 }
 0x73a   :  { %v683_v16 = vadd.f32 %v677_v14, %v553_v13 }
 0x73c   :  { %685 = vst.msk [vmem:[#allocation8] sm:$0xff] %vm67_vm0, %v683_v16 }
 0x741   :  { %v680_v20 = vpop.f32.mrf.mxu3 }
 0x742   :  { %v684_v21 = vadd.f32 %v680_v20, %v554_v19 }
 0x744   :  { %686 = vst.msk [vmem:[#allocation8 + $0x8] sm:$0xff] %vm67_vm0, %v684_v21 }
 0x745   :  { %699 = dma.vmem_to_hbm [thread:$0]  %s692_s16, 256, %s694_s19, [#allocation4], %s922_s23, %s922_s23, %s923_s24  }
 0x746   :  { %919 = dma.done.wait [#allocation4], 256  }
 0x747   :  { %920 = vsyncadd [#allocation4], 4294967040 }
 0x748   :  { %704 = vsyncpa [#allocation3], 1 }
 0x749   :  { %705 = vsyncpa [#allocation6], 1 }
 0x74a   :  { %706 = vsyncpa [#allocation4], 1 }

</bundles_post_ra>
